<compile_context>
chip_gen: v7x
topology: tpu7x:2x2x1
jax: 0.10.0
libtpu: 0.0.40
codegen_flags: <defaults>
</compile_context>

<pallas_src>
import jax
import jax.numpy as jnp
from jax.experimental import pallas as pl
from jax.experimental.pallas import tpu as pltpu


INPUT_SIZE = 17
HIDDEN_SIZE = 128
OUTPUT_SIZE = 5
PADDED_OUTPUT = 8  # lane-slim output width (== full array dim, so tiling-legal)


def _round_up(n, m):
    return ((n + m - 1) // m) * m


def _is_multi_tensorcore_chip():
    """True on chips where the 'parallel' grid axis is sharded across >1 TC."""
    try:
        kind = jax.devices()[0].device_kind.lower()
    except Exception:
        return False
    # v7x has 2 independent TCs per chip; v4/v5p expose a fused megacore.
    return any(tag in kind for tag in ("v7", "v4", "v5p"))


def _mlp_kernel(x_ref, w1_ref, b1_ref, w2_ref, b2_ref, w3_ref, b3_ref, o_ref):
    # x tile (tb, 17) f32 -> bf16 inside the kernel (free VPU work under DMA)
    # so all three matmuls take the bf16 MXU path.
    x = x_ref[...].astype(jnp.bfloat16)

    # fc1 + ReLU: accumulate in f32, bias-add/ReLU in f32, repack to bf16.
    h1 = jnp.dot(x, w1_ref[...], preferred_element_type=jnp.float32) + b1_ref[...]
    h1 = jnp.maximum(h1, 0.0).astype(jnp.bfloat16)

    # fc2 + ReLU
    h2 = jnp.dot(h1, w2_ref[...], preferred_element_type=jnp.float32) + b2_ref[...]
    h2 = jnp.maximum(h2, 0.0).astype(jnp.bfloat16)

    # fc3: output lanes padded 5 -> 8; padded columns carry zero weights/bias.
    o_ref[...] = (
        jnp.dot(h2, w3_ref[...], preferred_element_type=jnp.float32) + b3_ref[...]
    ).astype(o_ref.dtype)


def prepare_params(params):
    """One-time weight prep for the Pallas path: bf16 cast + zero lane-padding.

    Must be re-run whenever the raw params are updated (the padded columns of
    w3/b3 must stay exactly zero).
    """
    w3p = (
        jnp.zeros((HIDDEN_SIZE, PADDED_OUTPUT), jnp.bfloat16)
        .at[:, :OUTPUT_SIZE]
        .set(params["w3"].astype(jnp.bfloat16))
    )
    b3p = (
        jnp.zeros((1, PADDED_OUTPUT), jnp.float32)
        .at[:, :OUTPUT_SIZE]
        .set(params["b3"].astype(jnp.float32).reshape(1, OUTPUT_SIZE))
    )
    return {
        "w1": params["w1"].astype(jnp.bfloat16),
        "b1": params["b1"].astype(jnp.float32).reshape(1, HIDDEN_SIZE),
        "w2": params["w2"].astype(jnp.bfloat16),
        "b2": params["b2"].astype(jnp.float32).reshape(1, HIDDEN_SIZE),
        "w3": w3p,
        "b3": b3p,
    }


def torcs_controller_forward(
    x,
    params,
    *,
    prepared=None,
    batch_tile=2048,
    min_pallas_batch=256,
    force_pallas=False,
):
    """TORCSController forward pass.

    x: (B, INPUT_SIZE) float32
    params: dict with w1 (17,128), b1 (1,128), w2 (128,128), b2 (1,128),
            w3 (128,5), b3 (1,5)  (float32)
    prepared: optional output of prepare_params(params); built on the fly if
              omitted (one-time prep is cheaper for repeated calls).
    """
    x = x.astype(jnp.float32)
    B = x.shape[0]

    # Tiny batches: the fused XLA HLO beats pallas_call launch/pipeline
    # overhead for this ~70 KFLOP/row model.
    if B < min_pallas_batch and not force_pallas:
        h1 = jnp.maximum(x @ params["w1"] + params["b1"], 0.0)
        h2 = jnp.maximum(h1 @ params["w2"] + params["b2"], 0.0)
        return h2 @ params["w3"] + params["b3"]

    if prepared is None:
        prepared = prepare_params(params)
    w1, b1 = prepared["w1"], prepared["b1"]
    w2, b2 = prepared["w2"], prepared["b2"]
    w3p, b3p = prepared["w3"], prepared["b3"]

    # Batch tile: multiple of 8 sublanes, big enough to amortize per-step
    # overhead.  Only on multi-TC chips (v7x / megacore) do we force >= 2
    # "parallel" grid steps; on single-TC v5e/v6e that split is pure overhead.
    tb = min(batch_tile, _round_up(B, 8))
    tb = max(8, _round_up(tb, 8))
    if _is_multi_tensorcore_chip() and B > 512 and pl.cdiv(B, tb) < 2:
        # ~half the batch per core; keep the M tile 256-aligned for the MXU.
        tb = max(256, _round_up(pl.cdiv(B, 2), 256))

    grid = (pl.cdiv(B, tb),)  # ragged last block handled (masked) by Pallas

    flops = 2 * B * (
        INPUT_SIZE * HIDDEN_SIZE
        + HIDDEN_SIZE * HIDDEN_SIZE
        + HIDDEN_SIZE * PADDED_OUTPUT
    )
    bytes_accessed = (
        B * INPUT_SIZE * 4                        # x (f32)
        + (w1.size + w2.size + w3p.size) * 2      # bf16 weights
        + (b1.size + b2.size + b3p.size) * 4      # f32 biases
        + B * PADDED_OUTPUT * 4                   # f32 output (slim)
    )

    # Weight/bias blocks are grid-invariant (index_map always (0, 0)), so
    # Pallas keeps them resident and does not re-DMA them on later grid steps.
    in_specs = [
        pl.BlockSpec((tb, INPUT_SIZE), lambda i: (i, 0)),
        pl.BlockSpec((INPUT_SIZE, HIDDEN_SIZE), lambda i: (0, 0)),
        pl.BlockSpec((1, HIDDEN_SIZE), lambda i: (0, 0)),
        pl.BlockSpec((HIDDEN_SIZE, HIDDEN_SIZE), lambda i: (0, 0)),
        pl.BlockSpec((1, HIDDEN_SIZE), lambda i: (0, 0)),
        pl.BlockSpec((HIDDEN_SIZE, PADDED_OUTPUT), lambda i: (0, 0)),
        pl.BlockSpec((1, PADDED_OUTPUT), lambda i: (0, 0)),
    ]
    out_spec = pl.BlockSpec((tb, PADDED_OUTPUT), lambda i: (i, 0))

    out = pl.pallas_call(
        _mlp_kernel,
        out_shape=jax.ShapeDtypeStruct((B, PADDED_OUTPUT), jnp.float32),
        grid_spec=pltpu.PrefetchScalarGridSpec(
            num_scalar_prefetch=0,
            grid=grid,
            in_specs=in_specs,
            out_specs=out_spec,
        ),
        compiler_params=pltpu.CompilerParams(
            dimension_semantics=("parallel",),
        ),
        cost_estimate=pl.CostEstimate(
            flops=flops, transcendentals=0, bytes_accessed=bytes_accessed
        ),
    )(x, w1, b1, w2, b2, w3p, b3p)

    # Strip the lane padding of the last layer.
    return out[:, :OUTPUT_SIZE]


def init_params(key):
    """Deterministic parameter init mimicking nn.Linear's U(-1/sqrt(fan_in), +)."""
    k1, k2, k3, k4, k5, k6 = jax.random.split(key, 6)

    def uniform(k, shape, fan_in):
        bound = 1.0 / jnp.sqrt(fan_in)
        return jax.random.uniform(k, shape, jnp.float32, -bound, bound)

    return {
        "w1": uniform(k1, (INPUT_SIZE, HIDDEN_SIZE), INPUT_SIZE),
        "b1": uniform(k2, (1, HIDDEN_SIZE), INPUT_SIZE),
        "w2": uniform(k3, (HIDDEN_SIZE, HIDDEN_SIZE), HIDDEN_SIZE),
        "b2": uniform(k4, (1, HIDDEN_SIZE), HIDDEN_SIZE),
        "w3": uniform(k5, (HIDDEN_SIZE, OUTPUT_SIZE), HIDDEN_SIZE),
        "b3": uniform(k6, (1, OUTPUT_SIZE), HIDDEN_SIZE),
    }


def _reference_forward(x, p):
    h1 = jnp.maximum(x @ p["w1"] + p["b1"], 0.0)
    h2 = jnp.maximum(h1 @ p["w2"] + p["b2"], 0.0)
    return h2 @ p["w3"] + p["b3"]


if __name__ == "__main__":
    key = jax.random.PRNGKey(0)
    k_params, k_x1, k_x2, k_x3 = jax.random.split(key, 4)

    params = init_params(k_params)
    prepared = prepare_params(params)  # one-time weight prep

    # 1) Small demo batch: force the Pallas path so the kernel is exercised.
    x_small = jax.random.normal(k_x1, (8, INPUT_SIZE), jnp.float32)
    out_small = jax.block_until_ready(
        torcs_controller_forward(x_small, params, prepared=prepared, force_pallas=True)
    )
    ref_small = _reference_forward(x_small, params)
    assert out_small.shape == (8, OUTPUT_SIZE)
    # bf16 weights/activations (f32 accumulation) vs pure-f32 reference.
    assert jnp.allclose(out_small, ref_small, atol=5e-2, rtol=5e-2), "mismatch (small)"

    # 2) Ragged batch on the default (large-tile) path: single masked block.
    x_mid = jax.random.normal(k_x2, (300, INPUT_SIZE), jnp.float32)
    out_mid = jax.block_until_ready(
        torcs_controller_forward(x_mid, params, prepared=prepared)
    )
    ref_mid = _reference_forward(x_mid, params)
    assert out_mid.shape == (300, OUTPUT_SIZE)
    assert jnp.allclose(out_mid, ref_mid, atol=5e-2, rtol=5e-2), "mismatch (mid)"

    # 3) Multi-step grid + ragged last block (forces 3 grid steps of 256 rows).
    x_big = jax.random.normal(k_x3, (520, INPUT_SIZE), jnp.float32)
    out_big = jax.block_until_ready(
        torcs_controller_forward(x_big, params, prepared=prepared, batch_tile=256)
    )
    ref_big = _reference_forward(x_big, params)
    assert out_big.shape == (520, OUTPUT_SIZE)
    assert jnp.allclose(out_big, ref_big, atol=5e-2, rtol=5e-2), "mismatch (big)"

    print("KERNEL_OK")
</pallas_src>

<mosaic_0001>
module attributes {stable_mosaic.version = 11 : i64} {
  func.func @_mlp_kernel(%arg0: i32, %arg1: memref<8x17xf32, #tpu.memory_space<vmem>>, %arg2: memref<17x128xbf16, #tpu.memory_space<vmem>>, %arg3: memref<1x128xf32, #tpu.memory_space<vmem>>, %arg4: memref<128x128xbf16, #tpu.memory_space<vmem>>, %arg5: memref<1x128xf32, #tpu.memory_space<vmem>>, %arg6: memref<128x8xbf16, #tpu.memory_space<vmem>>, %arg7: memref<1x8xf32, #tpu.memory_space<vmem>>, %arg8: memref<8x8xf32, #tpu.memory_space<vmem>>) attributes {dimension_semantics = [#tpu.dimension_semantics<parallel>], iteration_bounds = array<i64: 1>, scalar_prefetch = 0 : i64, scratch_operands = 0 : i64, tpu.core_type = #tpu.core_type<tc>, window_params = [{transform_indices = @transform_0, window_bounds = array<i64: 8, 17>}, {pipeline_mode = #tpu.pipeline_mode<synchronous>, transform_indices = @transform_1, window_bounds = array<i64: 17, 128>}, {pipeline_mode = #tpu.pipeline_mode<synchronous>, transform_indices = @transform_2, window_bounds = array<i64: 1, 128>}, {pipeline_mode = #tpu.pipeline_mode<synchronous>, transform_indices = @transform_3, window_bounds = array<i64: 128, 128>}, {pipeline_mode = #tpu.pipeline_mode<synchronous>, transform_indices = @transform_4, window_bounds = array<i64: 1, 128>}, {pipeline_mode = #tpu.pipeline_mode<synchronous>, transform_indices = @transform_5, window_bounds = array<i64: 128, 8>}, {pipeline_mode = #tpu.pipeline_mode<synchronous>, transform_indices = @transform_6, window_bounds = array<i64: 1, 8>}, {transform_indices = @transform_7, window_bounds = array<i64: 8, 8>}]} {
    %c0 = arith.constant 0 : index
    %c0_0 = arith.constant 0 : index
    %0 = vector.load %arg1[%c0, %c0_0] : memref<8x17xf32, #tpu.memory_space<vmem>>, vector<8x17xf32>
    %1 = arith.truncf %0 : vector<8x17xf32> to vector<8x17xbf16>
    %c0_1 = arith.constant 0 : index
    %c0_2 = arith.constant 0 : index
    %2 = vector.load %arg2[%c0_1, %c0_2] : memref<17x128xbf16, #tpu.memory_space<vmem>>, vector<17x128xbf16>
    %cst = arith.constant dense<0.000000e+00> : vector<8x128xf32>
    %3 = tpu.matmul %1, %2, %cst {dimension_numbers = #tpu.dot_dimension_numbers<[1], [0], [0], [1], [0, 0, 1, 1], [], []>} : vector<8x17xbf16>, vector<17x128xbf16>, vector<8x128xf32> -> vector<8x128xf32>
    %c0_3 = arith.constant 0 : index
    %c0_4 = arith.constant 0 : index
    %4 = vector.load %arg3[%c0_3, %c0_4] : memref<1x128xf32, #tpu.memory_space<vmem>>, vector<1x128xf32>
    %5 = vector.broadcast %4 : vector<1x128xf32> to vector<8x128xf32>
    %6 = arith.addf %3, %5 : vector<8x128xf32>
    %cst_5 = arith.constant 0.000000e+00 : f32
    %7 = vector.broadcast %cst_5 : f32 to vector<8x128xf32>
    %8 = arith.maximumf %6, %7 : vector<8x128xf32>
    %9 = arith.truncf %8 : vector<8x128xf32> to vector<8x128xbf16>
    %c0_6 = arith.constant 0 : index
    %c0_7 = arith.constant 0 : index
    %10 = vector.load %arg4[%c0_6, %c0_7] : memref<128x128xbf16, #tpu.memory_space<vmem>>, vector<128x128xbf16>
    %cst_8 = arith.constant dense<0.000000e+00> : vector<8x128xf32>
    %11 = tpu.matmul %9, %10, %cst_8 {dimension_numbers = #tpu.dot_dimension_numbers<[1], [0], [0], [1], [0, 0, 1, 1], [], []>} : vector<8x128xbf16>, vector<128x128xbf16>, vector<8x128xf32> -> vector<8x128xf32>
    %c0_9 = arith.constant 0 : index
    %c0_10 = arith.constant 0 : index
    %12 = vector.load %arg5[%c0_9, %c0_10] : memref<1x128xf32, #tpu.memory_space<vmem>>, vector<1x128xf32>
    %13 = vector.broadcast %12 : vector<1x128xf32> to vector<8x128xf32>
    %14 = arith.addf %11, %13 : vector<8x128xf32>
    %cst_11 = arith.constant 0.000000e+00 : f32
    %15 = vector.broadcast %cst_11 : f32 to vector<8x128xf32>
    %16 = arith.maximumf %14, %15 : vector<8x128xf32>
    %17 = arith.truncf %16 : vector<8x128xf32> to vector<8x128xbf16>
    %c0_12 = arith.constant 0 : index
    %c0_13 = arith.constant 0 : index
    %18 = vector.load %arg6[%c0_12, %c0_13] : memref<128x8xbf16, #tpu.memory_space<vmem>>, vector<128x8xbf16>
    %cst_14 = arith.constant dense<0.000000e+00> : vector<8x8xf32>
    %19 = tpu.matmul %17, %18, %cst_14 {dimension_numbers = #tpu.dot_dimension_numbers<[1], [0], [0], [1], [0, 0, 1, 1], [], []>} : vector<8x128xbf16>, vector<128x8xbf16>, vector<8x8xf32> -> vector<8x8xf32>
    %c0_15 = arith.constant 0 : index
    %c0_16 = arith.constant 0 : index
    %20 = vector.load %arg7[%c0_15, %c0_16] : memref<1x8xf32, #tpu.memory_space<vmem>>, vector<1x8xf32>
    %21 = vector.broadcast %20 : vector<1x8xf32> to vector<8x8xf32>
    %22 = arith.addf %19, %21 : vector<8x8xf32>
    %c0_17 = arith.constant 0 : index
    %c0_18 = arith.constant 0 : index
    %23 = vector.load %arg8[%c0_17, %c0_18] : memref<8x8xf32, #tpu.memory_space<vmem>>, vector<8x8xf32>
    tpu.vector_store %arg8[%c0_17, %c0_18], %22 {strides = array<i32>} : memref<8x8xf32, #tpu.memory_space<vmem>>, vector<8x8xf32>,
    return
  }
  func.func @transform_0(%arg0: i32) -> (i32, i32) {
    %c0_i32 = arith.constant 0 : i32
    %c0_i32_0 = arith.constant 0 : i32
    return %arg0, %c0_i32 : i32, i32
  }
  func.func @transform_1(%arg0: i32) -> (i32, i32) {
    %c0_i32 = arith.constant 0 : i32
    %c0_i32_0 = arith.constant 0 : i32
    %c0_i32_1 = arith.constant 0 : i32
    return %c0_i32, %c0_i32_0 : i32, i32
  }
  func.func @transform_2(%arg0: i32) -> (i32, i32) {
    %c0_i32 = arith.constant 0 : i32
    %c0_i32_0 = arith.constant 0 : i32
    %c0_i32_1 = arith.constant 0 : i32
    return %c0_i32, %c0_i32_0 : i32, i32
  }
  func.func @transform_3(%arg0: i32) -> (i32, i32) {
    %c0_i32 = arith.constant 0 : i32
    %c0_i32_0 = arith.constant 0 : i32
    %c0_i32_1 = arith.constant 0 : i32
    return %c0_i32, %c0_i32_0 : i32, i32
  }
  func.func @transform_4(%arg0: i32) -> (i32, i32) {
    %c0_i32 = arith.constant 0 : i32
    %c0_i32_0 = arith.constant 0 : i32
    %c0_i32_1 = arith.constant 0 : i32
    return %c0_i32, %c0_i32_0 : i32, i32
  }
  func.func @transform_5(%arg0: i32) -> (i32, i32) {
    %c0_i32 = arith.constant 0 : i32
    %c0_i32_0 = arith.constant 0 : i32
    %c0_i32_1 = arith.constant 0 : i32
    return %c0_i32, %c0_i32_0 : i32, i32
  }
  func.func @transform_6(%arg0: i32) -> (i32, i32) {
    %c0_i32 = arith.constant 0 : i32
    %c0_i32_0 = arith.constant 0 : i32
    %c0_i32_1 = arith.constant 0 : i32
    return %c0_i32, %c0_i32_0 : i32, i32
  }
  func.func @transform_7(%arg0: i32) -> (i32, i32) {
    %c0_i32 = arith.constant 0 : i32
    %c0_i32_0 = arith.constant 0 : i32
    return %arg0, %c0_i32 : i32, i32
  }
}

</mosaic_0001>

<bundles_post_ra>
// kernel: tpu_custom_call.1
= control target key start
LH: loop header
LB: loop body
LE: loop exit
PB: predicated region body
PF: predicated region fallthrough
CT: control target
= control target key end

     0   :  { %12 = vsyncpa [#allocation3], 0  ;;  %s672_s0 = inlined_call_operand.hbm [shape: f32[8,17], index: 0, kind: input, shape index: {}]   ;;  %s673_s1 = inlined_call_operand.vmem [shape: bf16[17,128], index: 1, kind: input, shape index: {}]   ;;  %s674_s2 = inlined_call_operand.vmem [shape: f32[1,128], index: 2, kind: input, shape index: {}]   ;;  %s675_s3 = inlined_call_operand.vmem [shape: bf16[128,128], index: 3, kind: input, shape index: {}]   ;;  %s676_s4 = inlined_call_operand.vmem [shape: f32[1,128], index: 4, kind: input, shape index: {}]   ;;  %s677_s5 = inlined_call_operand.vmem [shape: bf16[128,8], index: 5, kind: input, shape index: {}]   ;;  %s678_s6 = inlined_call_operand.vmem [shape: f32[1,8], index: 6, kind: input, shape index: {}]   ;;  %s679_s7 = inlined_call_operand.hbm [shape: f32[8,8], index: 7, kind: output, shape index: {}]  }
   0x1   :  { %13 = vsyncpa [#allocation4], 0  ;;  %s516_s24 = smov [#allocation2]   ;;  %s468_s28 = scalar_lea.hbm %s672_s0, 128 }
   0x2   :  { %s20_s25 = sshll.u32 %s516_s24, 4  ;;  %p469_p0 = scmp.ne.s32.totalorder %s672_s0, %s468_s28  ;;  %s21_s25 = int_to_ptr.vmem [resolvable:$true] %s20_s25 }
   0x3   :  { %p472_p1 = scmp.lt.u32.totalorder %s468_s28, %s672_s0 }
   0x5   :  { %p474_p2 = pnand %p472_p1, %p469_p0 }
   0x7   :  { %477 = shalt.err (!%p474_p2)
}
   0x8   :  { %s478_s10 = scalar_lea.vmem %s21_s25, 128  ;;  %p483_p4 = scmp.lt.s32.totalorder %s21_s25, %s21_s25 }
   0x9   :  { %p479_p3 = scmp.ne.s32.totalorder %s21_s25, %s478_s10  ;;  %p484_p5 = scmp.lt.s32.totalorder %s478_s10, %s478_s10 }
   0xb   :  { %p485_p6 = por %p484_p5, %p483_p4 }
   0xd   :  { %p486_p7 = pnand %p485_p6, %p479_p3 }
   0xf   :  { %489 = shalt.err (!%p486_p7)
}
  0x10   :  { %23 = dma.hbm_to_vmem [thread:$0]  %s672_s0, 128, %s21_s25, [#allocation3]  }
  0x11   :  { %512 = dma.done.wait [#allocation3], 128  }
  0x12   :  { %513 = vsyncadd [#allocation3], 4294967168  ;;  %v517_v0 = vmov 0.0   ;;  %vm518_vm0 = vmmov 0   ;;  %vm65_vm1 = vcmask 1040384   ;;  %v450_v1 = vld [vmem:[%s673_s1] sm:$0xff]  }
  0x13   :  { %397 = vmatprep.subr.bf16.mxu0 %v517_v0  ;;  %401 = vmatprep.mubr.msk.bf16.mxu0 %vm518_vm0, %v517_v0  ;;  %v519_v2 = vmov 0   ;;  %v451_v4 = vld [vmem:[%s673_s1 + $0x8] ss:$0 sps:$4 sm:$0x11]   ;;  %v40_v5 = vld [vmem:[#allocation2] sm:$0xff]  ;;  %vm61_vm2 = vcmask 138240  }
  0x14   :  { %405 = vmatprep.subr.bf16.mxu1 %v517_v0  ;;  %421 = vmatprep.mubr.msk.bf16.mxu1 %vm518_vm0, %v517_v0  ;;  %v67_v3 = vsel %vm65_vm1, 65535, %v519_v2  ;;  %v452_v6 = vld [vmem:[%s675_s3] sm:$0xff]   ;;  %v453_v8 = vld [vmem:[%s675_s3 + $0x8] sm:$0xff]   ;;  %v41_v9 = vpack.c.bf16 %v40_v5, %v40_v5  ;;  %v454_v10 = vld [vmem:[%s675_s3 + $0x10] sm:$0xff]   ;;  %s520_s26 = smov [#allocation5]   ;;  %vm337_vm3 = vcmask 64512  }
  0x15   :  { %398 = vmatpush3.bf16.msra.mxu0 %v450_v1  ;;  %v69_v7 = vand.u32 %v451_v4, %v67_v3  ;;  %406 = vmatpush3.bf16.msra.mxu1 %v452_v6  ;;  %v455_v11 = vld [vmem:[%s675_s3 + $0x18] sm:$0xff]   ;;  %v456_v12 = vld [vmem:[%s675_s3 + $0x20] sm:$0xff]   ;;  %v457_v13 = vld [vmem:[%s675_s3 + $0x28] sm:$0xff]   ;;  %s345_s27 = sshll.u32 %s520_s26, 4  ;;  %s346_s27 = int_to_ptr.vmem [resolvable:$true] %s345_s27 }
  0x16   :  { %399 = vmatprep.subr.bf16.mxu0 %v517_v0  ;;  %407 = vmatprep.subr.bf16.mxu1 %v517_v0  ;;  %v458_v14 = vld [vmem:[%s675_s3 + $0x30] sm:$0xff]   ;;  %v459_v15 = vld [vmem:[%s675_s3 + $0x38] sm:$0xff]   ;;  %v460_v16 = vld [vmem:[%s677_s5] sm:$0xff]   ;;  %p495_p9 = scmp.lt.s32.totalorder %s346_s27, %s346_s27 }
  0x17   :  { %v461_v17 = vld [vmem:[%s677_s5 + $0x8] sm:$0xff]   ;;  %v462_v18 = vld [vmem:[%s677_s5 + $0x10] sm:$0xff]   ;;  %v463_v19 = vld [vmem:[%s677_s5 + $0x18] sm:$0xff]  }
  0x18   :  { %v464_v20 = vld [vmem:[%s677_s5 + $0x20] sm:$0xff]   ;;  %v465_v21 = vld [vmem:[%s677_s5 + $0x28] sm:$0xff]   ;;  %v466_v30 = vld [vmem:[%s677_s5 + $0x30] sm:$0xff]  }
  0x19   :  { %400 = vmatpush3.bf16.msra.mxu0 %v69_v7  ;;  %408 = vmatpush3.bf16.msra.mxu1 %v453_v8  ;;  %v354_v22 = vld [vmem:[%s674_s2] ss:$0 sm:$0xff]  ;;  %v467_v31 = vld [vmem:[%s677_s5 + $0x38] sm:$0xff]  }
  0x1a   :  { %425 = vmatprep.subr.bf16.mxu0 %v517_v0  ;;  %409 = vmatprep.subr.bf16.mxu1 %v517_v0  ;;  %v358_v32 = vld [vmem:[%s676_s4] ss:$0 sm:$0xff]  ;;  %s490_s4 = scalar_lea.vmem %s346_s27, 128 }
  0x1b   :  { %v367_v40 = vld [vmem:[%s678_s6] ss:$0 sm:$0xff]  ;;  %p491_p8 = scmp.ne.s32.totalorder %s346_s27, %s490_s4  ;;  %p496_p10 = scmp.lt.s32.totalorder %s490_s4, %s490_s4 }
  0x1c   :  { %402 = vmatmul.mubr.msk.bf16.vlgmr.msra.gmra.mrb[0].mxu0 %vm61_vm2, %v41_v9 }
  0x1d   :  { %441 = vmatprep.mubr.msk.bf16.mxu0 %vm518_vm0, %v517_v0  ;;  %410 = vmatpush3.bf16.msra.mxu1 %v454_v10  ;;  %p497_p11 = por %p496_p10, %p495_p9 }
  0x1e   :  { %411 = vmatprep.subr.bf16.mxu1 %v517_v0  ;;  %426 = vmatpush3.bf16.msra.mxu0 %v460_v16 }
  0x1f   :  { %427 = vmatprep.subr.bf16.mxu0 %v517_v0  ;;  %p498_p12 = pnand %p497_p11, %p491_p8 }
  0x21   :  { %412 = vmatpush3.bf16.msra.mxu1 %v455_v11 }
  0x22   :  { %413 = vmatprep.subr.bf16.mxu1 %v517_v0  ;;  %428 = vmatpush3.bf16.msra.mxu0 %v461_v17 }
  0x23   :  { %429 = vmatprep.subr.bf16.mxu0 %v517_v0 }
  0x25   :  { %414 = vmatpush3.bf16.msra.mxu1 %v456_v12 }
  0x26   :  { %415 = vmatprep.subr.bf16.mxu1 %v517_v0  ;;  %430 = vmatpush3.bf16.msra.mxu0 %v462_v18 }
  0x27   :  { %431 = vmatprep.subr.bf16.mxu0 %v517_v0 }
  0x29   :  { %416 = vmatpush3.bf16.msra.mxu1 %v457_v13 }
  0x2a   :  { %417 = vmatprep.subr.bf16.mxu1 %v517_v0  ;;  %432 = vmatpush3.bf16.msra.mxu0 %v463_v19 }
  0x2b   :  { %433 = vmatprep.subr.bf16.mxu0 %v517_v0 }
  0x2d   :  { %418 = vmatpush3.bf16.msra.mxu1 %v458_v14 }
  0x2e   :  { %419 = vmatprep.subr.bf16.mxu1 %v517_v0  ;;  %434 = vmatpush3.bf16.msra.mxu0 %v464_v20 }
  0x2f   :  { %435 = vmatprep.subr.bf16.mxu0 %v517_v0 }
  0x31   :  { %420 = vmatpush3.bf16.msra.mxu1 %v459_v15 }
  0x32   :  { %436 = vmatpush3.bf16.msra.mxu0 %v465_v21 }
  0x33   :  { %437 = vmatprep.subr.bf16.mxu0 %v517_v0 }
  0x36   :  { %438 = vmatpush3.bf16.msra.mxu0 %v466_v30 }
  0x37   :  { %439 = vmatprep.subr.bf16.mxu0 %v517_v0 }
  0x3a   :  { %440 = vmatpush3.bf16.msra.mxu0 %v467_v31 }
  0xef   :  { %v105_v23 = vpop.f32.mrb[0].mxu0 }
  0xf0   :  { %v106_v24 = vadd.f32 %v354_v22, %v105_v23  ;;  %v403_v25 = vpop.f32.mrb[1].mxu0 }
  0xf1   :  { %v108_v26 = vpop.f32.mrb[2].mxu0 }
  0xf2   :  { %v111_v27 = vmax.f32 %v106_v24, 0.0  ;;  %v404_v28 = vpop.f32.mrb[3].mxu0 }
  0xf4   :  { %v112_v29 = vpack.c.bf16 %v111_v27, %v111_v27 }
  0xf6   :  { %422 = vmatmul.mubr.bf16.vlgmr.msra.gmra.mrb[0].mxu1 %v112_v29 }
 0x1c9   :  { %v218_v33 = vpop.f32.mrb[0].mxu1 }
 0x1ca   :  { %v219_v34 = vadd.f32 %v358_v32, %v218_v33  ;;  %v423_v35 = vpop.f32.mrb[1].mxu1 }
 0x1cb   :  { %v221_v36 = vpop.f32.mrb[2].mxu1 }
 0x1cc   :  { %v224_v37 = vmax.f32 %v219_v34, 0.0  ;;  %v424_v38 = vpop.f32.mrb[3].mxu1 }
 0x1ce   :  { %v225_v39 = vpack.c.bf16 %v224_v37, %v224_v37 }
 0x1d0   :  { %442 = vmatmul.mubr.bf16.vlgmr.msra.gmra.mrb[4].mxu0 %v225_v39 }
 0x2a3   :  { %v331_v41 = vpop.f32.mrb[4].mxu0 }
 0x2a4   :  { %v332_v42 = vadd.f32 %v367_v40, %v331_v41  ;;  %v443_v43 = vpop.f32.mrb[5].mxu0 }
 0x2a5   :  { %v334_v44 = vpop.f32.mrb[6].mxu0 }
 0x2a6   :  { %v444_v45 = vpop.f32.mrb[7].mxu0  ;;  %338 = vst.msk [vmem:[#allocation5] sm:$0xff] %vm337_vm3, %v332_v42 }
 0x2a7   :  { %501 = shalt.err (!%p498_p12)
}
 0x2a8   :  { %s502_s6 = scalar_lea.hbm %s679_s7, 128 }
 0x2a9   :  { %p503_p13 = scmp.ne.s32.totalorder %s679_s7, %s502_s6  ;;  %p506_p0 = scmp.lt.u32.totalorder %s502_s6, %s679_s7 }
 0x2ab   :  { %p508_p1 = pnand %p506_p0, %p503_p13 }
 0x2ad   :  { %511 = shalt.err (!%p508_p1)
}
 0x2ae   :  { %348 = dma.vmem_to_hbm [thread:$0]  %s346_s27, 128, %s679_s7, [#allocation4]  }
 0x2af   :  { %514 = dma.done.wait [#allocation4], 128  }
 0x2b0   :  { %515 = vsyncadd [#allocation4], 4294967168 }
 0x2b1   :  { %352 = vsyncpa [#allocation3], 1 }
 0x2b2   :  { %353 = vsyncpa [#allocation4], 1 }

</bundles_post_ra>
